<compile_context>
chip_gen: v6e
topology: v6e:2x2x1
jax: 0.10.0
libtpu: 0.0.40
codegen_flags: <defaults>
</compile_context>

<pallas_src>
import jax
import jax.numpy as jnp
from jax import lax
from jax.experimental import pallas as pl
from jax.experimental.pallas import tpu as pltpu

HIDDEN = 128
BN_EPS = 1e-5
LEAKY_SLOPE = 0.2


def _round_up(x, m):
    return (x + m - 1) // m * m


def _encoder_kernel_fused(x_ref, w_ref, b_ref, o_ref):
    # Single-K-block fast path (nk == 1): no accumulator scratch, no pl.when phases.
    # x_ref: (TB, D) matmul dtype; w_ref: (D, 128); b_ref: (1, 128) f32; o_ref: (TB, 128) f32
    z = jnp.dot(x_ref[...].astype(w_ref.dtype), w_ref[...],
                preferred_element_type=jnp.float32) + b_ref[...]
    o_ref[...] = jnp.where(z > 0, z, LEAKY_SLOPE * z)


def _encoder_kernel_ktiled(x_ref, w_ref, b_ref, o_ref, acc_ref):
    # K-tiled path: resident f32 accumulator, bias folded into its init.
    # x_ref: (TB, TK); w_ref: (TK, 128); b_ref: (1, 128); o_ref/acc_ref: (TB, 128)
    k = pl.program_id(1)

    @pl.when(k == 0)
    def _():
        acc_ref[...] = jnp.broadcast_to(b_ref[...], acc_ref.shape)

    acc_ref[...] += jnp.dot(x_ref[...].astype(w_ref.dtype), w_ref[...],
                            preferred_element_type=jnp.float32)

    @pl.when(k == pl.num_programs(1) - 1)
    def _():
        z = acc_ref[...]
        o_ref[...] = jnp.where(z > 0, z, LEAKY_SLOPE * z)


def encoder_forward(x, gamma, beta, w_t, b, *,
                    block_b=None, block_k=None, matmul_dtype=jnp.bfloat16):
    B, D = x.shape
    assert w_t.shape == (D, HIDDEN)

    # ---- Single-pass full-batch BatchNorm1d stats (training mode, biased var). ----
    # One fused reduction over x (sum + sum-of-squares) instead of mean-then-var:
    # x is read once here, once by the kernel.
    xf = x.astype(jnp.float32)
    n = jnp.float32(B)
    s1 = jnp.sum(xf, axis=0, keepdims=True)
    s2 = jnp.sum(xf * xf, axis=0, keepdims=True)
    mean = s1 / n
    var = jnp.maximum(s2 / n - mean * mean, 0.0)           # biased variance, clamped
    rstd = lax.rsqrt(var + BN_EPS)
    scale = gamma.reshape(1, D).astype(jnp.float32) * rstd           # (1, D)
    shift = beta.reshape(1, D).astype(jnp.float32) - mean * scale    # (1, D)

    # ---- Fold the BN affine into the Linear weight / bias (O(D*128) prep). --------
    w32 = w_t.astype(jnp.float32)                                    # (D, 128)
    w_folded = (w32 * scale.reshape(D, 1)).astype(matmul_dtype)      # (D, 128)
    b_folded = (shift @ w32 + b.reshape(1, HIDDEN)).astype(jnp.float32)

    # Stream x to the kernel in the matmul dtype (bf16 => half the HBM traffic).
    x_kern = x if x.dtype == matmul_dtype else x.astype(matmul_dtype)
    x_itemsize = jnp.dtype(matmul_dtype).itemsize

    # ---- Contraction tiling: exactly cover D (no padding, no garbage in K). -------
    if block_k is None:
        if D <= 2048:
            block_k = D
        else:
            block_k = D
            for cand in range(2048, 127, -128):   # largest /128 divisor of D <= 2048
                if D % cand == 0:
                    block_k = cand
                    break
    if D % block_k != 0:
        block_k = D                                # never leave garbage in the reduction
    nk = D // block_k

    # ---- Batch tiling (cdiv grid, no padding copies). ------------------------------
    if block_b is None:
        block_b = 1024 if x_itemsize <= 2 else 512
        # Cap double-buffered x footprint (~24 MiB) so it fits v7x's 64 MiB VMEM
        # alongside weight / bias / accumulator / output buffers.
        while block_b > 8 and 2 * block_b * block_k * x_itemsize > 24 * 1024 * 1024:
            block_b //= 2
    if B <= block_b:
        # Split the batch in two when possible so both v7x TensorCores (the
        # "parallel" axis) get work; tiny batches use a single full block.
        block_b = _round_up(pl.cdiv(B, 2), 8) if B >= 16 else B
    nb = pl.cdiv(B, block_b)

    compiler_params_1d = pltpu.CompilerParams(
        dimension_semantics=("parallel",),
        vmem_limit_bytes=48 * 1024 * 1024,
    )
    compiler_params_2d = pltpu.CompilerParams(
        dimension_semantics=("parallel", "arbitrary"),
        vmem_limit_bytes=48 * 1024 * 1024,
    )

    if nk == 1:
        out = pl.pallas_call(
            _encoder_kernel_fused,
            out_shape=jax.ShapeDtypeStruct((B, HIDDEN), jnp.float32),
            grid_spec=pltpu.PrefetchScalarGridSpec(
                num_scalar_prefetch=0,
                grid=(nb,),
                in_specs=[
                    pl.BlockSpec((block_b, D), lambda i: (i, 0)),       # x tile
                    pl.BlockSpec((D, HIDDEN), lambda i: (0, 0)),        # folded weight
                    pl.BlockSpec((1, HIDDEN), lambda i: (0, 0)),        # folded bias
                ],
                out_specs=pl.BlockSpec((block_b, HIDDEN), lambda i: (i, 0)),
            ),
            compiler_params=compiler_params_1d,
        )(x_kern, w_folded, b_folded)
    else:
        out = pl.pallas_call(
            _encoder_kernel_ktiled,
            out_shape=jax.ShapeDtypeStruct((B, HIDDEN), jnp.float32),
            grid_spec=pltpu.PrefetchScalarGridSpec(
                num_scalar_prefetch=0,
                grid=(nb, nk),
                in_specs=[
                    pl.BlockSpec((block_b, block_k), lambda i, k: (i, k)),   # x tile
                    pl.BlockSpec((block_k, HIDDEN), lambda i, k: (k, 0)),    # weight slice
                    pl.BlockSpec((1, HIDDEN), lambda i, k: (0, 0)),          # bias (resident)
                ],
                out_specs=pl.BlockSpec((block_b, HIDDEN), lambda i, k: (i, 0)),
                scratch_shapes=[pltpu.VMEM((block_b, HIDDEN), jnp.float32)],
            ),
            compiler_params=compiler_params_2d,
        )(x_kern, w_folded, b_folded)

    return out


def init_params(key, input_dim):
    # BatchNorm1d: weight=1, bias=0 (PyTorch default init)
    gamma = jnp.ones((1, input_dim), jnp.float32)
    beta = jnp.zeros((1, input_dim), jnp.float32)
    # Linear: kaiming-uniform-like bounds, deterministic via PRNGKey
    kw, kb = jax.random.split(key)
    bound = 1.0 / jnp.sqrt(jnp.float32(input_dim))
    w = jax.random.uniform(kw, (HIDDEN, input_dim), jnp.float32, -bound, bound)
    b = jax.random.uniform(kb, (1, HIDDEN), jnp.float32, -bound, bound)
    w_t = w.T  # (input_dim, HIDDEN) so the kernel computes y @ W^T directly
    return gamma, beta, w_t, b


def reference_forward(x, gamma, beta, w_t, b):
    mean = jnp.mean(x, axis=0, keepdims=True)
    var = jnp.mean((x - mean) ** 2, axis=0, keepdims=True)
    y = (x - mean) / jnp.sqrt(var + BN_EPS) * gamma + beta
    z = y @ w_t + b
    return jnp.where(z > 0, z, LEAKY_SLOPE * z)


if __name__ == "__main__":
    B, D = 8, 32  # small shapes consistent with (batch, input_dim)
    key = jax.random.PRNGKey(0)
    kx, kp = jax.random.split(key)
    x = jax.random.normal(kx, (B, D), jnp.float32)

    gamma, beta, w_t, b = init_params(kp, D)
    ref = reference_forward(x, gamma, beta, w_t, b)

    # f32-MXU path: tight numerical check against the reference.
    out_f32 = jax.block_until_ready(
        encoder_forward(x, gamma, beta, w_t, b, matmul_dtype=jnp.float32))
    assert out_f32.shape == (B, HIDDEN)
    assert jnp.allclose(out_f32, ref, atol=2e-4, rtol=2e-4)

    # bf16-MXU default perf path: bf16 x / folded bf16 weights, f32 accumulation.
    out = jax.block_until_ready(encoder_forward(x, gamma, beta, w_t, b))
    assert out.shape == (B, HIDDEN)
    assert jnp.allclose(out, ref, atol=5e-2, rtol=5e-2)

    print("KERNEL_OK")
</pallas_src>

<mosaic_0001>
module attributes {stable_mosaic.version = 11 : i64} {
  func.func @_encoder_kernel_fused(%arg0: i32, %arg1: memref<8x32xf32, #tpu.memory_space<vmem>>, %arg2: memref<32x128xf32, #tpu.memory_space<vmem>>, %arg3: memref<1x128xf32, #tpu.memory_space<vmem>>, %arg4: memref<8x128xf32, #tpu.memory_space<vmem>>) attributes {dimension_semantics = [#tpu.dimension_semantics<parallel>], iteration_bounds = array<i64: 1>, scalar_prefetch = 0 : i64, scratch_operands = 0 : i64, tpu.core_type = #tpu.core_type<tc>, window_params = [{transform_indices = @transform_0, window_bounds = array<i64: 8, 32>}, {pipeline_mode = #tpu.pipeline_mode<synchronous>, transform_indices = @transform_1, window_bounds = array<i64: 32, 128>}, {pipeline_mode = #tpu.pipeline_mode<synchronous>, transform_indices = @transform_2, window_bounds = array<i64: 1, 128>}, {transform_indices = @transform_3, window_bounds = array<i64: 8, 128>}]} {
    %c0 = arith.constant 0 : index
    %c0_0 = arith.constant 0 : index
    %0 = vector.load %arg1[%c0, %c0_0] : memref<8x32xf32, #tpu.memory_space<vmem>>, vector<8x32xf32>
    %c0_1 = arith.constant 0 : index
    %c0_2 = arith.constant 0 : index
    %1 = vector.load %arg2[%c0_1, %c0_2] : memref<32x128xf32, #tpu.memory_space<vmem>>, vector<32x128xf32>
    %cst = arith.constant dense<0.000000e+00> : vector<8x128xf32>
    %2 = tpu.matmul %0, %1, %cst {dimension_numbers = #tpu.dot_dimension_numbers<[1], [0], [0], [1], [0, 0, 1, 1], [], []>} : vector<8x32xf32>, vector<32x128xf32>, vector<8x128xf32> -> vector<8x128xf32>
    %c0_3 = arith.constant 0 : index
    %c0_4 = arith.constant 0 : index
    %3 = vector.load %arg3[%c0_3, %c0_4] : memref<1x128xf32, #tpu.memory_space<vmem>>, vector<1x128xf32>
    %4 = vector.broadcast %3 : vector<1x128xf32> to vector<8x128xf32>
    %5 = arith.addf %2, %4 : vector<8x128xf32>
    %cst_5 = arith.constant 0.000000e+00 : f32
    %6 = vector.broadcast %cst_5 : f32 to vector<8x128xf32>
    %7 = arith.cmpf ogt, %5, %6 : vector<8x128xf32>
    %cst_6 = arith.constant 2.000000e-01 : f32
    %8 = vector.broadcast %cst_6 : f32 to vector<8x128xf32>
    %9 = arith.mulf %8, %5 : vector<8x128xf32>
    %10 = arith.select %7, %5, %9 : vector<8x128xi1>, vector<8x128xf32>
    %c0_7 = arith.constant 0 : index
    %c0_8 = arith.constant 0 : index
    %11 = vector.load %arg4[%c0_7, %c0_8] : memref<8x128xf32, #tpu.memory_space<vmem>>, vector<8x128xf32>
    tpu.vector_store %arg4[%c0_7, %c0_8], %10 {strides = array<i32>} : memref<8x128xf32, #tpu.memory_space<vmem>>, vector<8x128xf32>,
    return
  }
  func.func @transform_0(%arg0: i32) -> (i32, i32) {
    %c0_i32 = arith.constant 0 : i32
    %c0_i32_0 = arith.constant 0 : i32
    return %arg0, %c0_i32 : i32, i32
  }
  func.func @transform_1(%arg0: i32) -> (i32, i32) {
    %c0_i32 = arith.constant 0 : i32
    %c0_i32_0 = arith.constant 0 : i32
    %c0_i32_1 = arith.constant 0 : i32
    return %c0_i32, %c0_i32_0 : i32, i32
  }
  func.func @transform_2(%arg0: i32) -> (i32, i32) {
    %c0_i32 = arith.constant 0 : i32
    %c0_i32_0 = arith.constant 0 : i32
    %c0_i32_1 = arith.constant 0 : i32
    return %c0_i32, %c0_i32_0 : i32, i32
  }
  func.func @transform_3(%arg0: i32) -> (i32, i32) {
    %c0_i32 = arith.constant 0 : i32
    %c0_i32_0 = arith.constant 0 : i32
    return %arg0, %c0_i32 : i32, i32
  }
}

</mosaic_0001>

<bundles_post_ra>
// kernel: tpu_custom_call.1
= control target key start
LH: loop header
LB: loop body
LE: loop exit
PB: predicated region body
PF: predicated region fallthrough
CT: control target
= control target key end

     0   :  { %8 = vsyncpa [#allocation3], 0  ;;  %s277_s0 = inlined_call_operand.hbm [shape: f32[8,32], index: 0, kind: input, shape index: {}]   ;;  %s278_s1 = inlined_call_operand.hbm [shape: f32[32,128], index: 1, kind: input, shape index: {}]   ;;  %s279_s2 = inlined_call_operand.vmem [shape: f32[1,128], index: 2, kind: input, shape index: {}]   ;;  %s280_s3 = inlined_call_operand.hbm [shape: f32[8,128], index: 3, kind: output, shape index: {}]  }
   0x1   :  { %9 = vsyncpa [#allocation6], 0 }
   0x2   :  { %10 = vsyncpa [#allocation4], 0  ;;  %s238_s12 = smov [#allocation2]   ;;  %s239_s14 = smov [#allocation5]  }
   0x3   :  { %s17_s13 = sshll.u32 %s238_s12, 4  ;;  %s26_s15 = sshll.u32 %s239_s14, 4  ;;  %s18_s13 = int_to_ptr.vmem [resolvable:$true] %s17_s13  ;;  %s27_s15 = int_to_ptr.vmem [resolvable:$true] %s26_s15 }
   0x4   :  { %s180_s16 = scalar_lea.vmem %s18_s13, 128  ;;  %p185_p1 = scmp.lt.s32.totalorder %s18_s13, %s18_s13 }
   0x5   :  { %p181_p0 = scmp.ne.s32.totalorder %s18_s13, %s180_s16  ;;  %p186_p2 = scmp.lt.s32.totalorder %s180_s16, %s180_s16 }
   0x7   :  { %p187_p3 = por %p186_p2, %p185_p1 }
   0x9   :  { %p188_p4 = pnand %p187_p3, %p181_p0 }
   0xb   :  { %191 = shalt.err (!%p188_p4)
}
   0xc   :  { %20 = dma.hbm_to_vmem [thread:$0]  %s277_s0, 128, %s18_s13, [#allocation3]  }
   0xd   :  { %s200_s19 = scalar_lea.vmem %s27_s15, 512  ;;  %p205_p6 = scmp.lt.s32.totalorder %s27_s15, %s27_s15 }
   0xe   :  { %p201_p5 = scmp.ne.s32.totalorder %s27_s15, %s200_s19  ;;  %p206_p7 = scmp.lt.s32.totalorder %s200_s19, %s200_s19 }
  0x10   :  { %p207_p8 = por %p206_p7, %p205_p6 }
  0x12   :  { %p208_p9 = pnand %p207_p8, %p201_p5 }
  0x14   :  { %211 = shalt.err (!%p208_p9)
}
  0x15   :  { %s240_s20 = smov 128   ;;  %s241_s21 = smov 8  }
  0x16   :  { %32 = dma.hbm_to_vmem [thread:$0]  %s278_s1, 512, %s27_s15, [#allocation6], %s240_s20, %s240_s20, %s241_s21  }
  0x17   :  { %232 = dma.done.wait [#allocation3], 128  }
  0x18   :  { %233 = vsyncadd [#allocation3], 4294967168 }
  0x19   :  { %234 = dma.done.wait [#allocation6], 512  }
  0x1a   :  { %235 = vsyncadd [#allocation6], 4294966784  ;;  %v242_v0 = vmov 0.0   ;;  %vm243_vm0 = vmmov 0   ;;  %v45_v1 = vld [vmem:[#allocation5 + $0x18] sm:$0xff]  ;;  %v44_v2 = vld [vmem:[#allocation5 + $0x10] sm:$0xff] }
  0x1b   :  { %154 = vmatprep.subr.mxu0 %v242_v0  ;;  %162 = vmatprep.mubr.msk.f32.mxu0 %vm243_vm0, %v242_v0  ;;  %v43_v3 = vld [vmem:[#allocation5 + $0x8] sm:$0xff]  ;;  %v42_v4 = vld [vmem:[#allocation5] sm:$0xff]  ;;  %v41_v5 = vld [vmem:[#allocation2] sm:$0xff]  ;;  %vm53_vm1 = vcmask 261120   ;;  %s244_s24 = smov [#allocation7]  }
  0x1c   :  { %155 = vmatpush3.msra.mxu0 %v45_v1  ;;  %v147_v6 = vld [vmem:[%s279_s2] ss:$0 sm:$0xff]  ;;  %s137_s25 = sshll.u32 %s244_s24, 4  ;;  %s138_s25 = int_to_ptr.vmem [resolvable:$true] %s137_s25 }
  0x1d   :  { %156 = vmatprep.subr.mxu0 %v242_v0  ;;  %s212_s26 = scalar_lea.vmem %s138_s25, 128  ;;  %p217_p11 = scmp.lt.s32.totalorder %s138_s25, %s138_s25 }
  0x1e   :  { %157 = vmatpush3.msra.mxu0 %v44_v2  ;;  %p213_p10 = scmp.ne.s32.totalorder %s138_s25, %s212_s26  ;;  %p218_p12 = scmp.lt.s32.totalorder %s212_s26, %s212_s26 }
  0x1f   :  { %158 = vmatprep.subr.mxu0 %v242_v0 }
  0x20   :  { %159 = vmatpush3.msra.mxu0 %v43_v3  ;;  %p219_p13 = por %p218_p12, %p217_p11 }
  0x21   :  { %160 = vmatprep.subr.mxu0 %v242_v0 }
  0x22   :  { %161 = vmatpush3.msra.mxu0 %v42_v4  ;;  %p220_p0 = pnand %p219_p13, %p213_p10 }
  0x23   :  { %163 = vmatmul.mubr.msk.f32.vlgmr.msra.gmra.mxu0 %vm53_vm1, %v41_v5 }
  0xe3   :  { %v123_v7 = vpop.f32.mrf.mxu0 }
  0xe4   :  { %v124_v8 = vadd.f32 %v147_v6, %v123_v7 }
  0xe5   :  { %v164_v9 = vpop.f32.mrf.mxu0 }
  0xe6   :  { %v128_v10 = vmul.f32 0.2, %v124_v8  ;;  %vm127_vm2 = vcmp.gt.f32.partialorder %v124_v8, 0.0 }
  0xe8   :  { %v129_v11 = vsel %vm127_vm2, %v124_v8, %v128_v10 }
  0xe9   :  { %130 = vst [vmem:[#allocation7] sm:$0xff] %v129_v11 }
  0xea   :  { %223 = shalt.err (!%p220_p0)
}
  0xeb   :  { %140 = dma.vmem_to_hbm [thread:$0]  %s138_s25, 128, %s280_s3, [#allocation4]  }
  0xec   :  { %236 = dma.done.wait [#allocation4], 128  }
  0xed   :  { %237 = vsyncadd [#allocation4], 4294967168 }
  0xee   :  { %144 = vsyncpa [#allocation3], 1 }
  0xef   :  { %145 = vsyncpa [#allocation6], 1 }
  0xf0   :  { %146 = vsyncpa [#allocation4], 1 }

</bundles_post_ra>
